<compile_context>
chip_gen: v7x
topology: tpu7x:2x2x1
jax: 0.10.0
libtpu: 0.0.40
codegen_flags: <defaults>
</compile_context>

<pallas_src>
import numpy as np
import jax
import jax.numpy as jnp
from jax.experimental import pallas as pl
from jax.experimental.pallas import tpu as pltpu


# ---------------------------------------------------------------------------
# __init__-time deterministic mask construction (mirrors the PyTorch module).
# ---------------------------------------------------------------------------
def _roll_list(lst, offset):
    # PyTorch: mask_list[-offset:] + mask_list[:-offset]
    if offset == 0:
        return list(lst)
    return lst[-offset:] + lst[:-offset]


def build_masks(num_input_frames=16, mask_num=784):
    T = num_input_frames // 2                  # 8
    s0, s1, s2 = 1, 2, 2                       # mask_stride
    H = W = 14
    h, w = H // s1, W // s2                    # 7, 7
    cell = s0 * s1 * s2                        # 4
    spatial_small_patch_num = h * w            # 49
    mask_per_patch = mask_num // (T * spatial_small_patch_num)
    mask_list = [1] * mask_per_patch + [0] * (cell - mask_per_patch)

    # test_mask built in rearranged space [T, 49, 4], folded back to [T, 14, 14]
    tm = np.zeros((T, spatial_small_patch_num, cell), dtype=np.float32)
    for t in range(T):
        off = t % cell
        tm[t, :, :] = np.asarray(_roll_list(mask_list, off), dtype=np.float32)[None, :]
    # 't (h w) (s0 s1 s2) -> (t s0) (h s1) (w s2)'
    tm = tm.reshape(T, h, w, s0, s1, s2).transpose(0, 3, 1, 4, 2, 5)
    test_mask = tm.reshape(T * s0, h * s1, w * s2)          # (8, 14, 14)

    # train_mask: [s1*s2, T, s1*s2] = [4, 8, 4]
    train_list = []
    for i in range(s1 * s2):
        trm = np.zeros((T, cell), dtype=np.float32)
        for t in range(T):
            off = (t + i) % cell
            trm[t, :] = np.asarray(_roll_list(mask_list, off), dtype=np.float32)
        train_list.append(trm)
    train_mask = np.stack(train_list, axis=0)

    return test_mask, train_mask, spatial_small_patch_num


def build_train_variants(train_mask, T=8, H=14, W=14, s1=2, s2=2):
    """For each of the 4 train-mask indices i, the full flattened INVERTED
    output mask that results if every spatial patch chose index i.
    Shape (4, T*H*W)."""
    n_idx = train_mask.shape[0]
    h, w = H // s1, W // s2
    inv_train = (1.0 - train_mask).astype(np.float32)        # (4, T, 4)
    v = inv_train.reshape(n_idx, T, 1, s1, 1, s2)            # cell c = s1_idx*2 + s2_idx
    v = np.broadcast_to(v, (n_idx, T, h, s1, w, s2))
    return np.ascontiguousarray(v.reshape(n_idx, T * H * W))  # (4, 1568)


def build_scatter_matrix(variants, T=8, H=14, W=14, s1=2, s2=2):
    """S[(hw * n_idx + i), p] = variants[i, p] * [patch(p) == hw].

    With onehot[b, hw*n_idx + idx[b, hw]] = 1 (else 0):
        (onehot @ S)[b, p] = variants[idx[b, patch(p)], p]
    i.e. exactly the inverted selected train mask."""
    n_idx, P = variants.shape                                 # (4, 1568)
    h, w = H // s1, W // s2
    tt, yy, xx = np.meshgrid(np.arange(T), np.arange(H), np.arange(W), indexing='ij')
    patch = ((yy // s1) * w + (xx // s2)).reshape(-1)         # (P,) in [0, 49)
    S = np.zeros((h * w * n_idx, P), dtype=np.float32)
    for hw in range(h * w):
        cols = patch == hw
        for i in range(n_idx):
            S[hw * n_idx + i, cols] = variants[i, cols]
    return S                                                  # (196, 1568)


# ---------------------------------------------------------------------------
# Pallas kernels (batch-blocked, lane-dense [tile_b, T*H*W] output blocks)
# ---------------------------------------------------------------------------
def _eval_broadcast_kernel(inv_tm_ref, out_ref):
    # inv_tm_ref: (1, P) precomputed 1 - test_mask ; out_ref: (tile_b, P)
    out_ref[...] = jnp.broadcast_to(inv_tm_ref[...], out_ref.shape)


def _train_matmul_kernel(onehot_ref, s_ref, out_ref):
    # onehot_ref: (tile_b, 196) bf16 one-hot patch-index selection
    # s_ref:      (196, 1568)  bf16 scatter matrix (VMEM-resident, const idx map)
    # out_ref:    (tile_b, 1568) f32 == 1 - selected_mask  (exact 0/1 values)
    out_ref[...] = jnp.dot(onehot_ref[...], s_ref[...],
                           preferred_element_type=jnp.float32)


def _round_up(x, m):
    return ((x + m - 1) // m) * m


def _batch_tile(batch):
    # multiple of 16 (bf16 sublane packing), capped at 256 rows/block:
    # keeps per-block VMEM ~2 MB (fits v5e 16 MiB / v7x 64 MiB easily) while
    # amortizing the ~0.35 us per-grid-step overhead.
    return min(256, _round_up(batch, 16))


def eval_mask_pallas(inv_test_flat, batch):
    """Broadcast precomputed (1 - test_mask) over the batch; batch-blocked,
    'parallel' grid so both v7x TensorCores can drive the HBM writes."""
    P = inv_test_flat.shape[1]
    tile_b = _batch_tile(batch)
    return pl.pallas_call(
        _eval_broadcast_kernel,
        out_shape=jax.ShapeDtypeStruct((batch, P), jnp.float32),
        grid=(pl.cdiv(batch, tile_b),),
        in_specs=[pl.BlockSpec((1, P), lambda i: (0, 0))],
        out_specs=pl.BlockSpec((tile_b, P), lambda i: (i, 0)),
        compiler_params=pltpu.CompilerParams(dimension_semantics=("parallel",)),
    )(inv_test_flat)


def train_mask_pallas(onehot_bf16, scatter_bf16):
    """Fused gather+rearrange+complement as one MXU matmul:
    out = onehot @ S.  Input traffic ~1/16 of the output bytes; output is
    written lane-dense in (tile_b, 1568) f32 blocks."""
    B, K = onehot_bf16.shape
    _, P = scatter_bf16.shape
    tile_b = _batch_tile(B)
    return pl.pallas_call(
        _train_matmul_kernel,
        out_shape=jax.ShapeDtypeStruct((B, P), jnp.float32),
        grid=(pl.cdiv(B, tile_b),),
        in_specs=[pl.BlockSpec((tile_b, K), lambda i: (i, 0)),
                  pl.BlockSpec((K, P), lambda i: (0, 0))],   # S stays VMEM-resident
        out_specs=pl.BlockSpec((tile_b, P), lambda i: (i, 0)),
        compiler_params=pltpu.CompilerParams(dimension_semantics=("parallel",)),
    )(onehot_bf16, scatter_bf16)


# ---------------------------------------------------------------------------
# Module wrapper
# ---------------------------------------------------------------------------
class CellRunningMaskAgentJAX:
    def __init__(self, num_input_frames=16, mask_num=784):
        self.mask_num = mask_num
        self.mask_shape = [num_input_frames // 2, 14, 14]
        self.mask_stride = [1, 2, 2]
        self.patch_num = self.mask_shape[0] * 14 * 14

        test_mask, train_mask, sspn = build_masks(num_input_frames, mask_num)
        self.spatial_small_patch_num = sspn                      # 49
        self.test_mask = jnp.asarray(test_mask)                  # (T, 14, 14), original
        self.train_mask = jnp.asarray(train_mask)                # (4, T, 4), original
        self.n_train_idx = train_mask.shape[0]                   # 4

        # Hoisted `1 - mask` constants (complement commutes with the pure
        # permutations done by gather/transpose/reshape on a 0/1 tensor).
        self._inv_test_flat = jnp.asarray(
            (1.0 - test_mask).reshape(1, -1).astype(np.float32))     # (1, 1568)
        variants = build_train_variants(train_mask, T=self.mask_shape[0])  # (4, 1568)
        # Scatter matrix for the one-hot @ S MXU formulation; bf16 (0/1 exact).
        self._scatter_bf16 = jnp.asarray(
            build_scatter_matrix(variants, T=self.mask_shape[0]),
            dtype=jnp.bfloat16)                                       # (196, 1568)

        # cfg.AGENT.* flags default to False (attribute absent in cfg)
        self.temporal_shuffle = False
        self.spatial_repeat = False
        self.test_temporal_shuffle = False
        # NOTE: self.predictor = nn.Linear(1280, patch_num) is defined in the
        # PyTorch __init__ but never used in forward (dead code) -> omitted.

    # ---- helpers -----------------------------------------------------------
    def _train_selected_mask(self, mask_index_2d):
        """(B, 49) int -> (B, patch_num) float32 == 1 - selected_mask."""
        B = mask_index_2d.shape[0]
        onehot = jax.nn.one_hot(mask_index_2d, self.n_train_idx,
                                dtype=jnp.bfloat16)                   # (B, 49, 4)
        onehot = onehot.reshape(B, self.spatial_small_patch_num * self.n_train_idx)
        return train_mask_pallas(onehot, self._scatter_bf16)

    # ---- forward -----------------------------------------------------------
    def forward(self, x, mask_shape, training=False, rng=None):
        if isinstance(x, dict):
            x = x['video']
        B = x.shape[0]

        if training:
            assert rng is not None
            k_idx, k_seq = jax.random.split(rng)
            if self.spatial_repeat:
                mi = jax.random.randint(k_idx, (B, 1), 0, self.n_train_idx)
                mask_index = jnp.broadcast_to(mi, (B, self.spatial_small_patch_num))
            else:
                mask_index = jax.random.randint(
                    k_idx, (B, self.spatial_small_patch_num), 0, self.n_train_idx)
            # TODO(synk): temporal_shuffle defaults to False (cfg attribute absent) -> skipped.
            mask = self._train_selected_mask(mask_index)          # (B, 1568), Pallas MXU
            # RNG-driven seq_logits / top-k kept in plain JAX glue (as in PyTorch).
            seq_logits = jax.random.uniform(k_seq, (B, self.patch_num), jnp.float32)
            _values, indices = jax.lax.top_k(seq_logits, self.mask_num)
            # Lazy broadcast instead of materializing a (B, 784, 1568) repeat.
            seq_logits_rep = jnp.broadcast_to(
                seq_logits[:, None, :], (B, self.mask_num, self.patch_num))
            return {'seq_logits': seq_logits_rep, 'indices': indices, 'mask': mask}
        else:
            # TODO(synk): test_temporal_shuffle defaults to False -> skipped.
            return {'mask': eval_mask_pallas(self._inv_test_flat, B)}  # (B, 1568)


# ---------------------------------------------------------------------------
# Main
# ---------------------------------------------------------------------------
if __name__ == "__main__":
    key = jax.random.PRNGKey(0)
    k_x, k_tr, k_chk = jax.random.split(key, 3)

    B = 2
    # fake video input, NCTHW; only the batch dim is consumed by the agent
    x = jax.random.normal(k_x, (B, 3, 16, 16, 16), dtype=jnp.float32)

    agent = CellRunningMaskAgentJAX(num_input_frames=16, mask_num=784)
    T, H, W = agent.mask_shape
    P = agent.patch_num

    # --- eval path (module.eval() semantics) ---
    out_eval = agent.forward(x, mask_shape=agent.mask_shape, training=False)
    mask_eval = jax.block_until_ready(out_eval['mask'])
    ref_eval = 1.0 - jnp.tile(agent.test_mask.reshape(-1)[None, :], (B, 1))
    assert mask_eval.shape == (B, P)
    assert jnp.allclose(mask_eval, ref_eval), "eval mask mismatch vs reference"

    # --- training selection kernel: compare against a plain-JAX reference that
    #     mirrors the PyTorch take/permute/rearrange/complement chain ---
    mask_index_chk = jax.random.randint(k_chk, (B, agent.spatial_small_patch_num), 0, 4)
    pallas_train_mask = jax.block_until_ready(agent._train_selected_mask(mask_index_chk))
    sel = jnp.take(agent.train_mask, mask_index_chk.reshape(-1), axis=0)
    sel = sel.reshape(B, agent.spatial_small_patch_num, T, 4).transpose(0, 2, 1, 3)
    sel = sel.reshape(B, T, 7, 7, 1, 2, 2).transpose(0, 1, 4, 2, 5, 3, 6)
    ref_train = 1.0 - sel.reshape(B, P)
    assert pallas_train_mask.shape == (B, P)
    assert jnp.allclose(pallas_train_mask, ref_train), "train mask mismatch vs reference"

    # --- full training forward (random branch) ---
    out_train = agent.forward(x, mask_shape=agent.mask_shape, training=True, rng=k_tr)
    jax.block_until_ready(out_train['mask'])
    assert out_train['mask'].shape == (B, P)
    assert out_train['indices'].shape == (B, agent.mask_num)
    assert out_train['seq_logits'].shape == (B, agent.mask_num, P)
    assert jnp.all((out_train['mask'] == 0.0) | (out_train['mask'] == 1.0))
    # each complemented row keeps exactly mask_num ones (2 of every 4-cell)
    assert jnp.all(jnp.sum(out_train['mask'], axis=1) == agent.mask_num)

    print("KERNEL_OK")
</pallas_src>

<mosaic_0001>
module attributes {stable_mosaic.version = 11 : i64} {
  func.func @_eval_broadcast_kernel(%arg0: i32, %arg1: memref<1x1568xf32, #tpu.memory_space<vmem>>, %arg2: memref<16x1568xf32, #tpu.memory_space<vmem>>) attributes {dimension_semantics = [#tpu.dimension_semantics<parallel>], iteration_bounds = array<i64: 1>, scalar_prefetch = 0 : i64, scratch_operands = 0 : i64, tpu.core_type = #tpu.core_type<tc>, window_params = [{pipeline_mode = #tpu.pipeline_mode<synchronous>, transform_indices = @transform_0, window_bounds = array<i64: 1, 1568>}, {transform_indices = @transform_1, window_bounds = array<i64: 16, 1568>}]} {
    %c0 = arith.constant 0 : index
    %c0_0 = arith.constant 0 : index
    %0 = vector.load %arg1[%c0, %c0_0] : memref<1x1568xf32, #tpu.memory_space<vmem>>, vector<1x1568xf32>
    %1 = vector.shape_cast %0 : vector<1x1568xf32> to vector<1x1568xf32>
    %2 = vector.broadcast %1 : vector<1x1568xf32> to vector<16x1568xf32>
    %c0_1 = arith.constant 0 : index
    %c0_2 = arith.constant 0 : index
    %3 = vector.load %arg2[%c0_1, %c0_2] : memref<16x1568xf32, #tpu.memory_space<vmem>>, vector<16x1568xf32>
    tpu.vector_store %arg2[%c0_1, %c0_2], %2 {strides = array<i32>} : memref<16x1568xf32, #tpu.memory_space<vmem>>, vector<16x1568xf32>,
    return
  }
  func.func @transform_0(%arg0: i32) -> (i32, i32) {
    %c0_i32 = arith.constant 0 : i32
    %c0_i32_0 = arith.constant 0 : i32
    %c0_i32_1 = arith.constant 0 : i32
    return %c0_i32, %c0_i32_0 : i32, i32
  }
  func.func @transform_1(%arg0: i32) -> (i32, i32) {
    %c0_i32 = arith.constant 0 : i32
    %c0_i32_0 = arith.constant 0 : i32
    return %arg0, %c0_i32 : i32, i32
  }
}

</mosaic_0001>

<bundles_post_ra>
// kernel: tpu_custom_call.1
= control target key start
LH: loop header
LB: loop body
LE: loop exit
PB: predicated region body
PF: predicated region fallthrough
CT: control target
= control target key end

     0   :  { %6 = vsyncpa [#allocation3], 0  ;;  %s384_s0 = inlined_call_operand.hbm [shape: f32[1,1568], index: 0, kind: input, shape index: {}]   ;;  %s385_s1 = inlined_call_operand.hbm [shape: f32[2,1568], index: 1, kind: output, shape index: {}]  }
   0x1   :  { %7 = vsyncpa [#allocation4], 0  ;;  %s321_s6 = smov [#allocation2]   ;;  %s273_s10 = scalar_lea.hbm %s384_s0, 208 }
   0x2   :  { %s14_s7 = sshll.u32 %s321_s6, 4  ;;  %p274_p0 = scmp.ne.s32.totalorder %s384_s0, %s273_s10  ;;  %s15_s7 = int_to_ptr.vmem [resolvable:$true] %s14_s7 }
   0x3   :  { %p277_p1 = scmp.lt.u32.totalorder %s273_s10, %s384_s0 }
   0x5   :  { %p279_p2 = pnand %p277_p1, %p274_p0 }
   0x7   :  { %282 = shalt.err (!%p279_p2)
}
   0x8   :  { %s283_s15 = scalar_lea.vmem %s15_s7, 208  ;;  %s287_s16 = scalar_lea.vmem %s15_s7, 224 }
   0x9   :  { %p284_p3 = scmp.ne.s32.totalorder %s15_s7, %s283_s15  ;;  %p288_p4 = scmp.lt.s32.totalorder %s15_s7, %s15_s7 }
   0xa   :  { %p289_p5 = scmp.lt.s32.totalorder %s287_s16, %s283_s15 }
   0xc   :  { %p290_p6 = por %p289_p5, %p288_p4 }
   0xe   :  { %p291_p7 = pnand %p290_p6, %p284_p3 }
  0x10   :  { %294 = shalt.err (!%p291_p7)
}
  0x11   :  { %17 = dma.hbm_to_vmem [thread:$0]  %s384_s0, 208, %s15_s7, [#allocation3]  }
  0x12   :  { %317 = dma.done.wait [#allocation3], 208  }
  0x13   :  { %318 = vsyncadd [#allocation3], 4294967088  ;;  %v25_v0 = vlaneseq  ;;  %v322_v1 = vmov 1983009808   ;;  %v21_v13 = vld [vmem:[#allocation2] sm:$0xff]  ;;  %vm221_vm0 = vcmask 254976  }
  0x14   :  { %v82_v2 = vunpack.c.l.s4 %v322_v1  ;;  %v22_v15 = vld [vmem:[#allocation2 + $0x8] sm:$0x1f] }
  0x15   :  { %v26_v3 = vshrl.u32 %v25_v0, 7 }
  0x16   :  { %v83_v4 = vunpack.c.0.s8 %v82_v2 }
  0x17   :  { %v27_v5 = vsub.s32 0, %v26_v3  ;;  %v31_v6 = vsub.s32 1, %v26_v3  ;;  %v35_v7 = vsub.s32 2, %v26_v3  ;;  %v39_v8 = vsub.s32 3, %v26_v3 }
  0x18   :  { %v43_v9 = vsub.s32 4, %v26_v3  ;;  %v47_v10 = vsub.s32 5, %v26_v3  ;;  %v51_v11 = vsub.s32 6, %v26_v3  ;;  %v55_v12 = vsub.s32 7, %v26_v3 }
  0x19   :  { %v348_v14 = vsub.s32 %v83_v4, %v26_v3  ;;  %v28_v16 = vrot.slane %v21_v13, %v27_v5  ;;  %v32_v17 = vrot.slane %v21_v13, %v31_v6  ;;  %v36_v18 = vrot.slane %v21_v13, %v35_v7 }
  0x1a   :  { %v40_v19 = vrot.slane %v21_v13, %v39_v8  ;;  %v44_v20 = vrot.slane %v21_v13, %v43_v9  ;;  %v48_v21 = vrot.slane %v21_v13, %v47_v10  ;;  %v52_v22 = vrot.slane %v21_v13, %v51_v11 }
  0x1b   :  { %v56_v23 = vrot.slane %v21_v13, %v55_v12  ;;  %v77_v24 = vcombine.low %v28_v16, %v32_v17  ;;  %v60_v26 = vrot.slane %v22_v15, %v27_v5  ;;  %v64_v27 = vrot.slane %v22_v15, %v31_v6 }
  0x1c   :  { %v79_v25 = vcombine.low %v36_v18, %v40_v19  ;;  %v113_v28 = vcombine.low %v44_v20, %v48_v21  ;;  %v68_v30 = vrot.slane %v22_v15, %v35_v7  ;;  %v72_v31 = vrot.slane %v22_v15, %v39_v8 }
  0x1d   :  { %v115_v29 = vcombine.low %v52_v22, %v56_v23  ;;  %v87_v32 = vrot.slane %v77_v24, %v348_v14  ;;  %v149_v34 = vcombine.low %v60_v26, %v64_v27  ;;  %v76_v35 = vrot.slane %v22_v15, %v43_v9 }
  0x1e   :  { %v101_v33 = vrot.slane %v79_v25, %v348_v14  ;;  %v123_v36 = vrot.slane %v113_v28, %v348_v14  ;;  %v151_v38 = vcombine.low %v68_v30, %v72_v31  ;;  %v78_v39 = vcombine.high %v28_v16, %v32_v17 }
  0x1f   :  { %v137_v37 = vrot.slane %v115_v29, %v348_v14  ;;  %v159_v41 = vrot.slane %v149_v34, %v348_v14  ;;  %v192_v42 = vrot.slane %v76_v35, %v348_v14  ;;  %v80_v47 = vcombine.high %v36_v18, %v40_v19 }
  0x20   :  { %v109_v40 = vcombine.low %v87_v32, %v101_v33  ;;  %v110_v43 = vcombine.high %v87_v32, %v101_v33  ;;  %v173_v45 = vrot.slane %v151_v38, %v348_v14  ;;  %v94_v49 = vrot.slane %v78_v39, %v348_v14 }
  0x21   :  { %v145_v44 = vcombine.low %v123_v36, %v137_v37  ;;  %v146_v46 = vcombine.high %v123_v36, %v137_v37  ;;  %222 = vst.msk [vmem:[#allocation5 + $0x18] sm:$0x3] %vm221_vm0, %v192_v42  ;;  %238 = vst.msk [vmem:[#allocation5 + $0x80] sm:$0x3] %vm221_vm0, %v192_v42  ;;  %v200_v48 = vcombine.high %v192_v42, %v192_v42 }
  0x22   :  { %218 = vst [vmem:[#allocation5] sm:$0xff] %v109_v40  ;;  %235 = vst [vmem:[#allocation5 + $0x68] sm:$0xff] %v109_v40  ;;  %v114_v50 = vcombine.high %v44_v20, %v48_v21  ;;  %v116_v51 = vcombine.high %v52_v22, %v56_v23  ;;  %v181_v52 = vcombine.low %v159_v41, %v173_v45 }
  0x23   :  { %223 = vst [vmem:[#allocation5 + $0x1a] sm:$0xff] %v110_v43  ;;  %239 = vst [vmem:[#allocation5 + $0x82] sm:$0xff] %v110_v43  ;;  %v182_v53 = vcombine.high %v159_v41, %v173_v45  ;;  %v108_v54 = vrot.slane %v80_v47, %v348_v14  ;;  %v150_v55 = vcombine.high %v60_v26, %v64_v27 }
  0x24   :  { %219 = vst [vmem:[#allocation5 + $0x8] sm:$0xff] %v145_v44  ;;  %236 = vst [vmem:[#allocation5 + $0x70] sm:$0xff] %v145_v44  ;;  %v130_v56 = vrot.slane %v114_v50, %v348_v14  ;;  %v144_v57 = vrot.slane %v116_v51, %v348_v14  ;;  %v152_v58 = vcombine.high %v68_v30, %v72_v31 }
  0x25   :  { %224 = vst [vmem:[#allocation5 + $0x22] sm:$0xff] %v146_v46  ;;  %240 = vst [vmem:[#allocation5 + $0x8a] sm:$0xff] %v146_v46  ;;  %v185_v59 = vcombine.high %v76_v35, %v76_v35  ;;  %v111_v60 = vcombine.low %v94_v49, %v108_v54  ;;  %v166_v61 = vrot.slane %v150_v55, %v348_v14 }
  0x26   :  { %226 = vst.msk [vmem:[#allocation5 + $0x32] sm:$0x3] %vm221_vm0, %v200_v48  ;;  %242 = vst.msk [vmem:[#allocation5 + $0x9a] sm:$0x3] %vm221_vm0, %v200_v48  ;;  %v112_v62 = vcombine.high %v94_v49, %v108_v54  ;;  %v147_v63 = vcombine.low %v130_v56, %v144_v57  ;;  %v180_v0 = vrot.slane %v152_v58, %v348_v14 }
  0x27   :  { %220 = vst [vmem:[#allocation5 + $0x10] sm:$0xff] %v181_v52  ;;  %237 = vst [vmem:[#allocation5 + $0x78] sm:$0xff] %v181_v52  ;;  %v199_v1 = vrot.slane %v185_v59, %v348_v14  ;;  %v148_v2 = vcombine.high %v130_v56, %v144_v57 }
  0x28   :  { %225 = vst [vmem:[#allocation5 + $0x2a] sm:$0xff] %v182_v53  ;;  %241 = vst [vmem:[#allocation5 + $0x92] sm:$0xff] %v182_v53  ;;  %v183_v3 = vcombine.low %v166_v61, %v180_v0  ;;  %v184_v4 = vcombine.high %v166_v61, %v180_v0 }
  0x29   :  { %227 = vst [vmem:[#allocation5 + $0x34] sm:$0xff] %v111_v60  ;;  %243 = vst [vmem:[#allocation5 + $0x9c] sm:$0xff] %v111_v60  ;;  %v201_v5 = vcombine.high %v199_v1, %v199_v1 }
  0x2a   :  { %231 = vst [vmem:[#allocation5 + $0x4e] sm:$0xff] %v112_v62  ;;  %247 = vst [vmem:[#allocation5 + $0xb6] sm:$0xff] %v112_v62 }
  0x2b   :  { %228 = vst [vmem:[#allocation5 + $0x3c] sm:$0xff] %v147_v63  ;;  %244 = vst [vmem:[#allocation5 + $0xa4] sm:$0xff] %v147_v63 }
  0x2c   :  { %230 = vst.msk [vmem:[#allocation5 + $0x4c] sm:$0x3] %vm221_vm0, %v199_v1  ;;  %246 = vst.msk [vmem:[#allocation5 + $0xb4] sm:$0x3] %vm221_vm0, %v199_v1 }
  0x2d   :  { %232 = vst [vmem:[#allocation5 + $0x56] sm:$0xff] %v148_v2  ;;  %248 = vst [vmem:[#allocation5 + $0xbe] sm:$0xff] %v148_v2 }
  0x2e   :  { %229 = vst [vmem:[#allocation5 + $0x44] sm:$0xff] %v183_v3  ;;  %245 = vst [vmem:[#allocation5 + $0xac] sm:$0xff] %v183_v3 }
  0x2f   :  { %233 = vst [vmem:[#allocation5 + $0x5e] sm:$0xff] %v184_v4  ;;  %249 = vst [vmem:[#allocation5 + $0xc6] sm:$0xff] %v184_v4 }
  0x30   :  { %234 = vst.msk [vmem:[#allocation5 + $0x66] sm:$0x3] %vm221_vm0, %v201_v5  ;;  %250 = vst.msk [vmem:[#allocation5 + $0xce] sm:$0x3] %vm221_vm0, %v201_v5 }
  0x31   :  { %255 = vsyncadd [#allocation4], 2912  ;;  %s323_s0 = smov [#allocation5]  }
  0x32   :  { %s256_s19 = sshll.u32 %s323_s0, 4  ;;  %s257_s19 = int_to_ptr.vmem [resolvable:$true] %s256_s19 }
  0x33   :  { %s295_s20 = scalar_lea.vmem %s257_s19, 416  ;;  %s299_s21 = scalar_lea.vmem %s257_s19, 3328 }
  0x34   :  { %p296_p8 = scmp.ne.s32.totalorder %s257_s19, %s295_s20  ;;  %p300_p9 = scmp.lt.s32.totalorder %s257_s19, %s257_s19 }
  0x35   :  { %p301_p10 = scmp.lt.s32.totalorder %s299_s21, %s295_s20 }
  0x37   :  { %p302_p11 = por %p301_p10, %p300_p9 }
  0x39   :  { %p303_p12 = pnand %p302_p11, %p296_p8 }
  0x3b   :  { %306 = shalt.err (!%p303_p12)
}
  0x3c   :  { %s307_s24 = scalar_lea.hbm %s385_s1, 416 }
  0x3d   :  { %p308_p13 = scmp.ne.s32.totalorder %s385_s1, %s307_s24  ;;  %p311_p0 = scmp.lt.u32.totalorder %s307_s24, %s385_s1 }
  0x3f   :  { %p313_p1 = pnand %p311_p0, %p308_p13 }
  0x41   :  { %316 = shalt.err (!%p313_p1)
}
  0x42   :  { %s324_s29 = smov 416   ;;  %s325_s30 = smov 26  }
  0x43   :  { %262 = dma.vmem_to_hbm [thread:$0]  %s257_s19, 416, %s385_s1, [#allocation4], %s324_s29, %s324_s29, %s325_s30  }
  0x44   :  { %319 = dma.done.wait [#allocation4], 3328  }
  0x45   :  { %320 = vsyncadd [#allocation4], 4294963968 }
  0x46   :  { %266 = vsyncpa [#allocation3], 1 }
  0x47   :  { %267 = vsyncpa [#allocation4], 1 }

</bundles_post_ra>
